<compile_context>
chip_gen: v5e
topology: v5e:2x2
jax: 0.10.0
libtpu: 0.0.40
codegen_flags: <defaults>
</compile_context>

<pallas_src>
import math
import functools

import numpy as np
import jax
import jax.numpy as jnp
from jax.experimental import pallas as pl
from jax.experimental.pallas import tpu as pltpu  # TPU backend assumed

# ----------------------------- synthetic ESM2 config ------------------------
VOCAB = 33            # ESM2 vocabulary size
B, S = 2, 8           # batch, (padded) sequence length
BS = B * S            # flattened token rows
D = 32                # hidden size (mm_hidden_size)
H = 4                 # attention heads
HD = D // H           # head dim
HALF = HD // 2
HB = H * BS           # (head, token) rows for the all-head score matrix
FFN = 64              # intermediate size
NUM_LAYERS = 2
SELECT_LAYER = -2     # args.mm_protein_select_layer
SELECT_FEATURE = "cls"
EPS = 1e-5
PAD_ID = 1
CLS_ID = 0


# ----------------------------- in-kernel helpers ----------------------------
def _layer_norm(x, g, b):
    mu = jnp.mean(x, axis=-1, keepdims=True)
    var = jnp.mean((x - mu) * (x - mu), axis=-1, keepdims=True)
    return (x - mu) * jax.lax.rsqrt(var + EPS) * g + b


def _gelu(x):
    # TODO(synk): HF ESM uses exact erf-based GELU; tanh approximation used here.
    return jax.nn.gelu(x, approximate=True)


# ----------------------------- fused encoder kernel -------------------------
def fused_esm_kernel(x_ref, bias_ref, cos_ref, sin_ref, rot_ref, hmask_ref, sel_ref,
                     clssel_ref,
                     ln1g_ref, ln1b_ref, wqkv_ref, bqkv_ref, wo_ref, bo_ref,
                     ln2g_ref, ln2b_ref, w1_ref, b1_ref, w2_ref, b2_ref,
                     lnfg_ref, lnfb_ref, out_ref, *, num_layers, apply_final_ln):
    x = x_ref[...].astype(jnp.float32)      # (BS, D)  flattened batch
    bias = bias_ref[...]                    # (HB, BS) padding + block-diag batch mask
    cosf = cos_ref[...]                     # (BS, D)
    sinf = sin_ref[...]                     # (BS, D)
    rot = rot_ref[...]                      # (D, D)   signed rotate_half permutation
    hmask = hmask_ref[...]                  # (HB, D)  head-block mask
    sel = sel_ref[...]                      # (BS, HB) head-recombination selector
    cls_sel = clssel_ref[...]               # (B, BS)  CLS-row selector
    # 1/sqrt(HD) folded into the query-side head mask; hoisted out of the loop.
    hq = hmask * (1.0 / math.sqrt(HD))

    for li in range(num_layers):            # static, unrolled (dead layers skipped)
        # ---- pre-LN multi-head self-attention with rotary embeddings ----
        h = _layer_norm(x, ln1g_ref[li], ln1b_ref[li])
        qkv = jnp.dot(h, wqkv_ref[li], preferred_element_type=jnp.float32) + bqkv_ref[li]
        q = qkv[:, 0:D]
        k = qkv[:, D:2 * D]
        v = qkv[:, 2 * D:3 * D]

        # RoPE on the full (BS, D) tensors: rotate_half expressed as a matmul
        # with a precomputed signed permutation -> no slices/concats/rolls.
        q = q * cosf + jnp.dot(q, rot, preferred_element_type=jnp.float32) * sinf
        k = k * cosf + jnp.dot(k, rot, preferred_element_type=jnp.float32) * sinf

        # All-head scores in ONE dot: row block h of qbig keeps only head h's
        # lanes (already scaled), so contracting against full K gives q_h . k_h.
        qbig = jnp.concatenate([q] * H, axis=0) * hq                # (HB, D)
        scores = jax.lax.dot_general(
            qbig, k, (((1,), (1,)), ((), ())),
            preferred_element_type=jnp.float32) + bias              # (HB, BS)
        scores = scores - jnp.max(scores, axis=-1, keepdims=True)
        p = jnp.exp(scores)
        p = p * pl.reciprocal(jnp.sum(p, axis=-1, keepdims=True), approx=True)

        # All-head context in ONE dot, then recombine heads with ONE dot.
        ctx = jnp.dot(p, v, preferred_element_type=jnp.float32) * hmask   # (HB, D)
        attn = jnp.dot(sel, ctx, preferred_element_type=jnp.float32)      # (BS, D)
        attn = jnp.dot(attn, wo_ref[li], preferred_element_type=jnp.float32) + bo_ref[li]
        x = x + attn

        # ---- pre-LN feed-forward ----
        h2 = _layer_norm(x, ln2g_ref[li], ln2b_ref[li])
        ff = _gelu(jnp.dot(h2, w1_ref[li], preferred_element_type=jnp.float32) + b1_ref[li])
        ff = jnp.dot(ff, w2_ref[li], preferred_element_type=jnp.float32) + b2_ref[li]
        x = x + ff

    if apply_final_ln:      # only when the selected layer is the last one
        x = _layer_norm(x, lnfg_ref[...], lnfb_ref[...])

    # select_feature='cls': token 0 of each sequence == row b*S (always unpadded).
    # Extracted with one selector matmul instead of per-row slices + concat.
    out_ref[...] = jnp.dot(cls_sel, x,
                           preferred_element_type=jnp.float32).astype(out_ref.dtype)


# ----------------------------- wrapper-side constants ------------------------
def build_attention_constants(attention_mask):
    mask_flat = attention_mask.reshape(BS).astype(jnp.float32)
    batch_ids = jnp.repeat(jnp.arange(B, dtype=jnp.int32), S)
    same_batch = batch_ids[:, None] == batch_ids[None, :]
    key_valid = mask_flat[None, :] > 0.5
    bias = jnp.where(same_batch & key_valid, 0.0, -1e9).astype(jnp.float32)  # (BS, BS)
    bias_big = jnp.tile(bias, (H, 1))                                        # (HB, BS)

    row_head = jnp.repeat(jnp.arange(H, dtype=jnp.int32), BS)                # (HB,)
    col_head = jnp.arange(D, dtype=jnp.int32) // HD                          # (D,)
    hmask = (row_head[:, None] == col_head[None, :]).astype(jnp.float32)     # (HB, D)

    sel = jnp.tile(jnp.eye(BS, dtype=jnp.float32), (1, H))                   # (BS, HB)

    cls_sel = jnp.zeros((B, BS), jnp.float32)
    cls_sel = cls_sel.at[jnp.arange(B), jnp.arange(B) * S].set(1.0)          # (B, BS)
    return bias_big, hmask, sel, cls_sel


def build_rotary_constants():
    inv_freq = 1.0 / (10000.0 ** (jnp.arange(0, HD, 2, dtype=jnp.float32) / HD))
    t = jnp.arange(S, dtype=jnp.float32)
    freqs = jnp.outer(t, inv_freq)                       # (S, HD/2)
    emb = jnp.concatenate([freqs, freqs], axis=-1)       # (S, HD)
    cos_full = jnp.tile(jnp.tile(jnp.cos(emb), (1, H)), (B, 1))   # (BS, D)
    sin_full = jnp.tile(jnp.tile(jnp.sin(emb), (1, H)), (B, 1))   # (BS, D)

    # (x @ rot) == rotate_half(x) applied independently within each head block.
    rot = np.zeros((D, D), dtype=np.float32)
    for hh in range(H):
        lo = hh * HD
        for j in range(HALF):
            rot[lo + HALF + j, lo + j] = -1.0   # out col (first half)  <- -x[:, c+HALF]
            rot[lo + j, lo + HALF + j] = 1.0    # out col (second half) <-  x[:, c-HALF]
    return cos_full, sin_full, jnp.asarray(rot)


# ----------------------------- parameter construction ------------------------
def make_params(key):
    def nrm(k, shape, scale=0.02):
        return (scale * jax.random.normal(k, shape)).astype(jnp.float32)

    keys = jax.random.split(key, 2 + NUM_LAYERS)
    params = {"embed": nrm(keys[0], (VOCAB, D)),
              "final_ln_g": jnp.ones((1, D), jnp.float32),
              "final_ln_b": jnp.zeros((1, D), jnp.float32),
              "layers": []}
    for li in range(NUM_LAYERS):
        lk = jax.random.split(keys[2 + li], 8)
        params["layers"].append({
            "ln1_g": jnp.ones((1, D), jnp.float32), "ln1_b": jnp.zeros((1, D), jnp.float32),
            "wq": nrm(lk[0], (D, D)), "bq": jnp.zeros((1, D), jnp.float32),
            "wk": nrm(lk[1], (D, D)), "bk": jnp.zeros((1, D), jnp.float32),
            "wv": nrm(lk[2], (D, D)), "bv": jnp.zeros((1, D), jnp.float32),
            "wo": nrm(lk[3], (D, D)), "bo": jnp.zeros((1, D), jnp.float32),
            "ln2_g": jnp.ones((1, D), jnp.float32), "ln2_b": jnp.zeros((1, D), jnp.float32),
            "w1": nrm(lk[4], (D, FFN)), "b1": jnp.zeros((1, FFN), jnp.float32),
            "w2": nrm(lk[5], (FFN, D)), "b2": jnp.zeros((1, D), jnp.float32),
        })
    return params


# ----------------------------- encoder forward (glue + kernel) ---------------
def esm_protein_encoder_forward(token_ids, attention_mask, params):
    """Mirrors ESMProteinEncoder.encode_esm2 with select_feature='cls'.

    token_ids:      (B, S) int32
    attention_mask: (B, S) int32 (1 = real token, 0 = padding)
    returns:        (B, 1, D) — CLS feature per sequence (stacked form of the
                    list of (1, D) tensors returned by the PyTorch module).
    """
    if SELECT_FEATURE != "cls":
        raise ValueError(f"Unexpected select feature: {SELECT_FEATURE}")

    mask_f = attention_mask.astype(jnp.float32)
    # Embedding lookup (tokenizer/gather are glue; ESM2 has no absolute pos emb).
    # TODO(synk): ESM token-dropout / mask-ratio rescaling of embeddings not modeled.
    emb = jnp.take(params["embed"], token_ids, axis=0) * mask_f[:, :, None]   # (B,S,D)

    # hidden_states = [emb, layer_0, ..., layer_{L-1} (+ final LN on the last)].
    # Only the layers that feed hidden_states[SELECT_LAYER] are computed.
    sel_idx = SELECT_LAYER % (NUM_LAYERS + 1)
    layers_to_run = sel_idx
    apply_final_ln = (sel_idx == NUM_LAYERS)

    if layers_to_run == 0:          # selected the embedding output itself
        return emb[:, :1, :]

    bias_big, hmask, sel, cls_sel = build_attention_constants(attention_mask)
    cos_full, sin_full, rot = build_rotary_constants()

    live = params["layers"][:layers_to_run]
    stack = lambda name: jnp.stack([lp[name] for lp in live], axis=0)
    wqkv = jnp.stack([jnp.concatenate([lp["wq"], lp["wk"], lp["wv"]], axis=1) for lp in live])
    bqkv = jnp.stack([jnp.concatenate([lp["bq"], lp["bk"], lp["bv"]], axis=1) for lp in live])

    kernel = functools.partial(fused_esm_kernel,
                               num_layers=layers_to_run,
                               apply_final_ln=apply_final_ln)
    cls = pl.pallas_call(
        kernel,
        out_shape=jax.ShapeDtypeStruct((B, D), jnp.float32),
    )(emb.reshape(BS, D), bias_big, cos_full, sin_full, rot, hmask, sel, cls_sel,
      stack("ln1_g"), stack("ln1_b"), wqkv, bqkv,
      stack("wo"), stack("bo"), stack("ln2_g"), stack("ln2_b"),
      stack("w1"), stack("b1"), stack("w2"), stack("b2"),
      params["final_ln_g"], params["final_ln_b"])
    return cls[:, None, :]          # (B, 1, D)


# ----------------------------- pure-JAX reference -----------------------------
def reference_forward(token_ids, attention_mask, params):
    mask_f = attention_mask.astype(jnp.float32)
    x = jnp.take(params["embed"], token_ids, axis=0) * mask_f[:, :, None]   # (B,S,D)
    sel_idx = SELECT_LAYER % (NUM_LAYERS + 1)
    if sel_idx == 0:
        return x[:, :1, :]

    inv_freq = 1.0 / (10000.0 ** (jnp.arange(0, HD, 2, dtype=jnp.float32) / HD))
    t = jnp.arange(S, dtype=jnp.float32)
    freqs = jnp.outer(t, inv_freq)
    embf = jnp.concatenate([freqs, freqs], axis=-1)            # (S, HD)
    cos = jnp.cos(embf)[None, None]                            # (1,1,S,HD)
    sin = jnp.sin(embf)[None, None]

    def rotate_half(z):
        z1, z2 = jnp.split(z, 2, axis=-1)
        return jnp.concatenate([-z2, z1], axis=-1)

    bias = jnp.where(mask_f[:, None, None, :] > 0.5, 0.0, -1e9)  # (B,1,1,S)

    for li in range(sel_idx):
        lp = params["layers"][li]
        h = _layer_norm(x, lp["ln1_g"], lp["ln1_b"])
        q = h @ lp["wq"] + lp["bq"]
        k = h @ lp["wk"] + lp["bk"]
        v = h @ lp["wv"] + lp["bv"]
        sh = lambda z: z.reshape(B, S, H, HD).transpose(0, 2, 1, 3)
        q, k, v = sh(q), sh(k), sh(v)
        q = q * cos + rotate_half(q) * sin
        k = k * cos + rotate_half(k) * sin
        scores = jnp.einsum("bhqd,bhkd->bhqk", q, k) / math.sqrt(HD) + bias
        p = jax.nn.softmax(scores, axis=-1)
        ctx = jnp.einsum("bhqk,bhkd->bhqd", p, v)
        ctx = ctx.transpose(0, 2, 1, 3).reshape(B, S, D)
        attn = ctx @ lp["wo"] + lp["bo"]
        x = x + attn
        h2 = _layer_norm(x, lp["ln2_g"], lp["ln2_b"])
        ff = _gelu(h2 @ lp["w1"] + lp["b1"]) @ lp["w2"] + lp["b2"]
        x = x + ff
    if sel_idx == NUM_LAYERS:
        x = _layer_norm(x, params["final_ln_g"], params["final_ln_b"])
    return x[:, :1, :]


# ----------------------------- main ------------------------------------------
if __name__ == "__main__":
    key = jax.random.PRNGKey(0)
    pkey, tkey = jax.random.split(key)
    params = make_params(pkey)

    # Synthetic "tokenized protein sequences": CLS at pos 0, amino-acid ids in
    # [4, 24), padding id 1; sequence lengths 8 and 6.
    ids = jax.random.randint(tkey, (B, S), 4, 24, dtype=jnp.int32)
    ids = ids.at[:, 0].set(CLS_ID)
    lengths = jnp.array([8, 6], dtype=jnp.int32)
    pos = jnp.arange(S, dtype=jnp.int32)[None, :]
    attention_mask = (pos < lengths[:, None]).astype(jnp.int32)
    ids = jnp.where(attention_mask == 1, ids, PAD_ID)

    forward = jax.jit(esm_protein_encoder_forward)
    feats = jax.block_until_ready(forward(ids, attention_mask, params))
    assert feats.shape == (B, 1, D)
    assert bool(jnp.all(jnp.isfinite(feats)))

    ref = reference_forward(ids, attention_mask, params)
    max_err = float(jnp.max(jnp.abs(feats - ref)))
    assert max_err < 5e-3, f"kernel/reference mismatch: max abs err = {max_err}"

    print("KERNEL_OK")
</pallas_src>

<mosaic_0001>
module attributes {stable_mosaic.version = 11 : i64} {
  func.func @fused_esm_kernel(%arg0: memref<16x32xf32, #tpu.memory_space<vmem>>, %arg1: memref<64x16xf32, #tpu.memory_space<vmem>>, %arg2: memref<16x32xf32, #tpu.memory_space<vmem>>, %arg3: memref<16x32xf32, #tpu.memory_space<vmem>>, %arg4: memref<32x32xf32, #tpu.memory_space<vmem>>, %arg5: memref<64x32xf32, #tpu.memory_space<vmem>>, %arg6: memref<16x64xf32, #tpu.memory_space<vmem>>, %arg7: memref<2x16xf32, #tpu.memory_space<vmem>>, %arg8: memref<1x1x32xf32, #tpu.memory_space<vmem>>, %arg9: memref<1x1x32xf32, #tpu.memory_space<vmem>>, %arg10: memref<1x32x96xf32, #tpu.memory_space<vmem>>, %arg11: memref<1x1x96xf32, #tpu.memory_space<vmem>>, %arg12: memref<1x32x32xf32, #tpu.memory_space<vmem>>, %arg13: memref<1x1x32xf32, #tpu.memory_space<vmem>>, %arg14: memref<1x1x32xf32, #tpu.memory_space<vmem>>, %arg15: memref<1x1x32xf32, #tpu.memory_space<vmem>>, %arg16: memref<1x32x64xf32, #tpu.memory_space<vmem>>, %arg17: memref<1x1x64xf32, #tpu.memory_space<vmem>>, %arg18: memref<1x64x32xf32, #tpu.memory_space<vmem>>, %arg19: memref<1x1x32xf32, #tpu.memory_space<vmem>>, %arg20: memref<1x32xf32, #tpu.memory_space<vmem>>, %arg21: memref<1x32xf32, #tpu.memory_space<vmem>>, %arg22: memref<2x32xf32, #tpu.memory_space<vmem>>) attributes {dimension_semantics = [], scalar_prefetch = 0 : i64, scratch_operands = 0 : i64, tpu.core_type = #tpu.core_type<tc>} {
    %c0 = arith.constant 0 : index
    %c0_0 = arith.constant 0 : index
    %0 = vector.load %arg0[%c0, %c0_0] : memref<16x32xf32, #tpu.memory_space<vmem>>, vector<16x32xf32>
    %c0_1 = arith.constant 0 : index
    %c0_2 = arith.constant 0 : index
    %1 = vector.load %arg1[%c0_1, %c0_2] : memref<64x16xf32, #tpu.memory_space<vmem>>, vector<64x16xf32>
    %c0_3 = arith.constant 0 : index
    %c0_4 = arith.constant 0 : index
    %2 = vector.load %arg2[%c0_3, %c0_4] : memref<16x32xf32, #tpu.memory_space<vmem>>, vector<16x32xf32>
    %c0_5 = arith.constant 0 : index
    %c0_6 = arith.constant 0 : index
    %3 = vector.load %arg3[%c0_5, %c0_6] : memref<16x32xf32, #tpu.memory_space<vmem>>, vector<16x32xf32>
    %c0_7 = arith.constant 0 : index
    %c0_8 = arith.constant 0 : index
    %4 = vector.load %arg4[%c0_7, %c0_8] : memref<32x32xf32, #tpu.memory_space<vmem>>, vector<32x32xf32>
    %c0_9 = arith.constant 0 : index
    %c0_10 = arith.constant 0 : index
    %5 = vector.load %arg5[%c0_9, %c0_10] : memref<64x32xf32, #tpu.memory_space<vmem>>, vector<64x32xf32>
    %c0_11 = arith.constant 0 : index
    %c0_12 = arith.constant 0 : index
    %6 = vector.load %arg6[%c0_11, %c0_12] : memref<16x64xf32, #tpu.memory_space<vmem>>, vector<16x64xf32>
    %c0_13 = arith.constant 0 : index
    %c0_14 = arith.constant 0 : index
    %7 = vector.load %arg7[%c0_13, %c0_14] : memref<2x16xf32, #tpu.memory_space<vmem>>, vector<2x16xf32>
    %cst = arith.constant 0.353553385 : f32
    %8 = vector.broadcast %cst : f32 to vector<64x32xf32>
    %9 = arith.mulf %5, %8 : vector<64x32xf32>
    %c0_15 = arith.constant 0 : index
    %c0_16 = arith.constant 0 : index
    %c0_17 = arith.constant 0 : index
    %10 = vector.load %arg8[%c0_15, %c0_16, %c0_17] : memref<1x1x32xf32, #tpu.memory_space<vmem>>, vector<1x1x32xf32>
    %11 = vector.shape_cast %10 : vector<1x1x32xf32> to vector<1x32xf32>
    %c0_18 = arith.constant 0 : index
    %c0_19 = arith.constant 0 : index
    %c0_20 = arith.constant 0 : index
    %12 = vector.load %arg9[%c0_18, %c0_19, %c0_20] : memref<1x1x32xf32, #tpu.memory_space<vmem>>, vector<1x1x32xf32>
    %13 = vector.shape_cast %12 : vector<1x1x32xf32> to vector<1x32xf32>
    %cst_21 = arith.constant dense<0.000000e+00> : vector<16xf32>
    %14 = vector.multi_reduction <add>, %0, %cst_21 [1] : vector<16x32xf32> to vector<16xf32>
    %15 = vector.shape_cast %14 : vector<16xf32> to vector<16x1xf32>
    %cst_22 = arith.constant 3.200000e+01 : f32
    %16 = vector.broadcast %cst_22 : f32 to vector<16x1xf32>
    %17 = arith.divf %15, %16 : vector<16x1xf32>
    %18 = vector.broadcast %17 : vector<16x1xf32> to vector<16x32xf32>
    %19 = arith.subf %0, %18 : vector<16x32xf32>
    %20 = vector.broadcast %17 : vector<16x1xf32> to vector<16x32xf32>
    %21 = arith.subf %0, %20 : vector<16x32xf32>
    %22 = arith.mulf %19, %21 : vector<16x32xf32>
    %cst_23 = arith.constant dense<0.000000e+00> : vector<16xf32>
    %23 = vector.multi_reduction <add>, %22, %cst_23 [1] : vector<16x32xf32> to vector<16xf32>
    %24 = vector.shape_cast %23 : vector<16xf32> to vector<16x1xf32>
    %cst_24 = arith.constant 3.200000e+01 : f32
    %25 = vector.broadcast %cst_24 : f32 to vector<16x1xf32>
    %26 = arith.divf %24, %25 : vector<16x1xf32>
    %27 = vector.broadcast %17 : vector<16x1xf32> to vector<16x32xf32>
    %28 = arith.subf %0, %27 : vector<16x32xf32>
    %cst_25 = arith.constant 9.99999974E-6 : f32
    %29 = vector.broadcast %cst_25 : f32 to vector<16x1xf32>
    %30 = arith.addf %26, %29 : vector<16x1xf32>
    %31 = math.rsqrt %30 : vector<16x1xf32>
    %32 = vector.broadcast %31 : vector<16x1xf32> to vector<16x32xf32>
    %33 = arith.mulf %28, %32 : vector<16x32xf32>
    %34 = vector.broadcast %11 : vector<1x32xf32> to vector<16x32xf32>
    %35 = arith.mulf %33, %34 : vector<16x32xf32>
    %36 = vector.broadcast %13 : vector<1x32xf32> to vector<16x32xf32>
    %37 = arith.addf %35, %36 : vector<16x32xf32>
    %c0_26 = arith.constant 0 : index
    %c0_27 = arith.constant 0 : index
    %c0_28 = arith.constant 0 : index
    %38 = vector.load %arg10[%c0_26, %c0_27, %c0_28] : memref<1x32x96xf32, #tpu.memory_space<vmem>>, vector<1x32x96xf32>
    %39 = vector.shape_cast %38 : vector<1x32x96xf32> to vector<32x96xf32>
    %cst_29 = arith.constant dense<0.000000e+00> : vector<16x96xf32>
    %40 = tpu.matmul %37, %39, %cst_29 {dimension_numbers = #tpu.dot_dimension_numbers<[1], [0], [0], [1], [0, 0, 1, 1], [], []>} : vector<16x32xf32>, vector<32x96xf32>, vector<16x96xf32> -> vector<16x96xf32>
    %c0_30 = arith.constant 0 : index
    %c0_31 = arith.constant 0 : index
    %c0_32 = arith.constant 0 : index
    %41 = vector.load %arg11[%c0_30, %c0_31, %c0_32] : memref<1x1x96xf32, #tpu.memory_space<vmem>>, vector<1x1x96xf32>
    %42 = vector.shape_cast %41 : vector<1x1x96xf32> to vector<1x96xf32>
    %43 = vector.broadcast %42 : vector<1x96xf32> to vector<16x96xf32>
    %44 = arith.addf %40, %43 : vector<16x96xf32>
    %45 = vector.extract_strided_slice %44 {offsets = [0, 0], sizes = [16, 32], strides = [1, 1]} : vector<16x96xf32> to vector<16x32xf32>
    %46 = vector.extract_strided_slice %44 {offsets = [0, 32], sizes = [16, 32], strides = [1, 1]} : vector<16x96xf32> to vector<16x32xf32>
    %47 = vector.extract_strided_slice %44 {offsets = [0, 64], sizes = [16, 32], strides = [1, 1]} : vector<16x96xf32> to vector<16x32xf32>
    %48 = arith.mulf %45, %2 : vector<16x32xf32>
    %cst_33 = arith.constant dense<0.000000e+00> : vector<16x32xf32>
    %49 = tpu.matmul %45, %4, %cst_33 {dimension_numbers = #tpu.dot_dimension_numbers<[1], [0], [0], [1], [0, 0, 1, 1], [], []>} : vector<16x32xf32>, vector<32x32xf32>, vector<16x32xf32> -> vector<16x32xf32>
    %50 = arith.mulf %49, %3 : vector<16x32xf32>
    %51 = arith.addf %48, %50 : vector<16x32xf32>
    %52 = arith.mulf %46, %2 : vector<16x32xf32>
    %cst_34 = arith.constant dense<0.000000e+00> : vector<16x32xf32>
    %53 = tpu.matmul %46, %4, %cst_34 {dimension_numbers = #tpu.dot_dimension_numbers<[1], [0], [0], [1], [0, 0, 1, 1], [], []>} : vector<16x32xf32>, vector<32x32xf32>, vector<16x32xf32> -> vector<16x32xf32>
    %54 = arith.mulf %53, %3 : vector<16x32xf32>
    %55 = arith.addf %52, %54 : vector<16x32xf32>
    %56 = tpu.concatenate %51, %51, %51, %51 in 0 : vector<16x32xf32>, vector<16x32xf32>, vector<16x32xf32>, vector<16x32xf32> -> vector<64x32xf32>
    %57 = arith.mulf %56, %9 : vector<64x32xf32>
    %cst_35 = arith.constant dense<0.000000e+00> : vector<64x16xf32>
    %58 = tpu.matmul %57, %55, %cst_35 {dimension_numbers = #tpu.dot_dimension_numbers<[1], [1], [0], [0], [0, 0, 1, 0], [], []>} : vector<64x32xf32>, vector<16x32xf32>, vector<64x16xf32> -> vector<64x16xf32>
    %59 = arith.addf %58, %1 : vector<64x16xf32>
    %cst_36 = arith.constant dense<0xFF800000> : vector<64xf32>
    %60 = vector.multi_reduction <maximumf>, %59, %cst_36 [1] : vector<64x16xf32> to vector<64xf32>
    %61 = vector.shape_cast %60 : vector<64xf32> to vector<64x1xf32>
    %62 = vector.broadcast %61 : vector<64x1xf32> to vector<64x16xf32>
    %63 = arith.subf %59, %62 : vector<64x16xf32>
    %64 = math.exp %63 : vector<64x16xf32>
    %cst_37 = arith.constant dense<0.000000e+00> : vector<64xf32>
    %65 = vector.multi_reduction <add>, %64, %cst_37 [1] : vector<64x16xf32> to vector<64xf32>
    %66 = vector.shape_cast %65 : vector<64xf32> to vector<64x1xf32>
    %67 = tpu.reciprocal %66 {approx = true} : vector<64x1xf32> -> vector<64x1xf32>
    %68 = vector.broadcast %67 : vector<64x1xf32> to vector<64x16xf32>
    %69 = arith.mulf %64, %68 : vector<64x16xf32>
    %cst_38 = arith.constant dense<0.000000e+00> : vector<64x32xf32>
    %70 = tpu.matmul %69, %47, %cst_38 {dimension_numbers = #tpu.dot_dimension_numbers<[1], [0], [0], [1], [0, 0, 1, 1], [], []>} : vector<64x16xf32>, vector<16x32xf32>, vector<64x32xf32> -> vector<64x32xf32>
    %71 = arith.mulf %70, %5 : vector<64x32xf32>
    %cst_39 = arith.constant dense<0.000000e+00> : vector<16x32xf32>
    %72 = tpu.matmul %6, %71, %cst_39 {dimension_numbers = #tpu.dot_dimension_numbers<[1], [0], [0], [1], [0, 0, 1, 1], [], []>} : vector<16x64xf32>, vector<64x32xf32>, vector<16x32xf32> -> vector<16x32xf32>
    %c0_40 = arith.constant 0 : index
    %c0_41 = arith.constant 0 : index
    %c0_42 = arith.constant 0 : index
    %73 = vector.load %arg12[%c0_40, %c0_41, %c0_42] : memref<1x32x32xf32, #tpu.memory_space<vmem>>, vector<1x32x32xf32>
    %74 = vector.shape_cast %73 : vector<1x32x32xf32> to vector<32x32xf32>
    %cst_43 = arith.constant dense<0.000000e+00> : vector<16x32xf32>
    %75 = tpu.matmul %72, %74, %cst_43 {dimension_numbers = #tpu.dot_dimension_numbers<[1], [0], [0], [1], [0, 0, 1, 1], [], []>} : vector<16x32xf32>, vector<32x32xf32>, vector<16x32xf32> -> vector<16x32xf32>
    %c0_44 = arith.constant 0 : index
    %c0_45 = arith.constant 0 : index
    %c0_46 = arith.constant 0 : index
    %76 = vector.load %arg13[%c0_44, %c0_45, %c0_46] : memref<1x1x32xf32, #tpu.memory_space<vmem>>, vector<1x1x32xf32>
    %77 = vector.shape_cast %76 : vector<1x1x32xf32> to vector<1x32xf32>
    %78 = vector.broadcast %77 : vector<1x32xf32> to vector<16x32xf32>
    %79 = arith.addf %75, %78 : vector<16x32xf32>
    %80 = arith.addf %0, %79 : vector<16x32xf32>
    %c0_47 = arith.constant 0 : index
    %c0_48 = arith.constant 0 : index
    %c0_49 = arith.constant 0 : index
    %81 = vector.load %arg14[%c0_47, %c0_48, %c0_49] : memref<1x1x32xf32, #tpu.memory_space<vmem>>, vector<1x1x32xf32>
    %82 = vector.shape_cast %81 : vector<1x1x32xf32> to vector<1x32xf32>
    %c0_50 = arith.constant 0 : index
    %c0_51 = arith.constant 0 : index
    %c0_52 = arith.constant 0 : index
    %83 = vector.load %arg15[%c0_50, %c0_51, %c0_52] : memref<1x1x32xf32, #tpu.memory_space<vmem>>, vector<1x1x32xf32>
    %84 = vector.shape_cast %83 : vector<1x1x32xf32> to vector<1x32xf32>
    %cst_53 = arith.constant dense<0.000000e+00> : vector<16xf32>
    %85 = vector.multi_reduction <add>, %80, %cst_53 [1] : vector<16x32xf32> to vector<16xf32>
    %86 = vector.shape_cast %85 : vector<16xf32> to vector<16x1xf32>
    %cst_54 = arith.constant 3.200000e+01 : f32
    %87 = vector.broadcast %cst_54 : f32 to vector<16x1xf32>
    %88 = arith.divf %86, %87 : vector<16x1xf32>
    %89 = vector.broadcast %88 : vector<16x1xf32> to vector<16x32xf32>
    %90 = arith.subf %80, %89 : vector<16x32xf32>
    %91 = vector.broadcast %88 : vector<16x1xf32> to vector<16x32xf32>
    %92 = arith.subf %80, %91 : vector<16x32xf32>
    %93 = arith.mulf %90, %92 : vector<16x32xf32>
    %cst_55 = arith.constant dense<0.000000e+00> : vector<16xf32>
    %94 = vector.multi_reduction <add>, %93, %cst_55 [1] : vector<16x32xf32> to vector<16xf32>
    %95 = vector.shape_cast %94 : vector<16xf32> to vector<16x1xf32>
    %cst_56 = arith.constant 3.200000e+01 : f32
    %96 = vector.broadcast %cst_56 : f32 to vector<16x1xf32>
    %97 = arith.divf %95, %96 : vector<16x1xf32>
    %98 = vector.broadcast %88 : vector<16x1xf32> to vector<16x32xf32>
    %99 = arith.subf %80, %98 : vector<16x32xf32>
    %cst_57 = arith.constant 9.99999974E-6 : f32
    %100 = vector.broadcast %cst_57 : f32 to vector<16x1xf32>
    %101 = arith.addf %97, %100 : vector<16x1xf32>
    %102 = math.rsqrt %101 : vector<16x1xf32>
    %103 = vector.broadcast %102 : vector<16x1xf32> to vector<16x32xf32>
    %104 = arith.mulf %99, %103 : vector<16x32xf32>
    %105 = vector.broadcast %82 : vector<1x32xf32> to vector<16x32xf32>
    %106 = arith.mulf %104, %105 : vector<16x32xf32>
    %107 = vector.broadcast %84 : vector<1x32xf32> to vector<16x32xf32>
    %108 = arith.addf %106, %107 : vector<16x32xf32>
    %c0_58 = arith.constant 0 : index
    %c0_59 = arith.constant 0 : index
    %c0_60 = arith.constant 0 : index
    %109 = vector.load %arg16[%c0_58, %c0_59, %c0_60] : memref<1x32x64xf32, #tpu.memory_space<vmem>>, vector<1x32x64xf32>
    %110 = vector.shape_cast %109 : vector<1x32x64xf32> to vector<32x64xf32>
    %cst_61 = arith.constant dense<0.000000e+00> : vector<16x64xf32>
    %111 = tpu.matmul %108, %110, %cst_61 {dimension_numbers = #tpu.dot_dimension_numbers<[1], [0], [0], [1], [0, 0, 1, 1], [], []>} : vector<16x32xf32>, vector<32x64xf32>, vector<16x64xf32> -> vector<16x64xf32>
    %c0_62 = arith.constant 0 : index
    %c0_63 = arith.constant 0 : index
    %c0_64 = arith.constant 0 : index
    %112 = vector.load %arg17[%c0_62, %c0_63, %c0_64] : memref<1x1x64xf32, #tpu.memory_space<vmem>>, vector<1x1x64xf32>
    %113 = vector.shape_cast %112 : vector<1x1x64xf32> to vector<1x64xf32>
    %114 = vector.broadcast %113 : vector<1x64xf32> to vector<16x64xf32>
    %115 = arith.addf %111, %114 : vector<16x64xf32>
    %116 = arith.mulf %115, %115 : vector<16x64xf32>
    %117 = arith.mulf %115, %116 : vector<16x64xf32>
    %cst_65 = arith.constant 4.471500e-02 : f32
    %118 = vector.broadcast %cst_65 : f32 to vector<16x64xf32>
    %119 = arith.mulf %118, %117 : vector<16x64xf32>
    %120 = arith.addf %115, %119 : vector<16x64xf32>
    %cst_66 = arith.constant 0.797884583 : f32
    %121 = vector.broadcast %cst_66 : f32 to vector<16x64xf32>
    %122 = arith.mulf %121, %120 : vector<16x64xf32>
    %123 = math.tanh %122 : vector<16x64xf32>
    %cst_67 = arith.constant 1.000000e+00 : f32
    %124 = vector.broadcast %cst_67 : f32 to vector<16x64xf32>
    %125 = arith.addf %124, %123 : vector<16x64xf32>
    %cst_68 = arith.constant 5.000000e-01 : f32
    %126 = vector.broadcast %cst_68 : f32 to vector<16x64xf32>
    %127 = arith.mulf %126, %125 : vector<16x64xf32>
    %128 = arith.mulf %115, %127 : vector<16x64xf32>
    %c0_69 = arith.constant 0 : index
    %c0_70 = arith.constant 0 : index
    %c0_71 = arith.constant 0 : index
    %129 = vector.load %arg18[%c0_69, %c0_70, %c0_71] : memref<1x64x32xf32, #tpu.memory_space<vmem>>, vector<1x64x32xf32>
    %130 = vector.shape_cast %129 : vector<1x64x32xf32> to vector<64x32xf32>
    %cst_72 = arith.constant dense<0.000000e+00> : vector<16x32xf32>
    %131 = tpu.matmul %128, %130, %cst_72 {dimension_numbers = #tpu.dot_dimension_numbers<[1], [0], [0], [1], [0, 0, 1, 1], [], []>} : vector<16x64xf32>, vector<64x32xf32>, vector<16x32xf32> -> vector<16x32xf32>
    %c0_73 = arith.constant 0 : index
    %c0_74 = arith.constant 0 : index
    %c0_75 = arith.constant 0 : index
    %132 = vector.load %arg19[%c0_73, %c0_74, %c0_75] : memref<1x1x32xf32, #tpu.memory_space<vmem>>, vector<1x1x32xf32>
    %133 = vector.shape_cast %132 : vector<1x1x32xf32> to vector<1x32xf32>
    %134 = vector.broadcast %133 : vector<1x32xf32> to vector<16x32xf32>
    %135 = arith.addf %131, %134 : vector<16x32xf32>
    %136 = arith.addf %80, %135 : vector<16x32xf32>
    %cst_76 = arith.constant dense<0.000000e+00> : vector<2x32xf32>
    %137 = tpu.matmul %7, %136, %cst_76 {dimension_numbers = #tpu.dot_dimension_numbers<[1], [0], [0], [1], [0, 0, 1, 1], [], []>} : vector<2x16xf32>, vector<16x32xf32>, vector<2x32xf32> -> vector<2x32xf32>
    %c0_77 = arith.constant 0 : index
    %c0_78 = arith.constant 0 : index
    %138 = vector.load %arg22[%c0_77, %c0_78] : memref<2x32xf32, #tpu.memory_space<vmem>>, vector<2x32xf32>
    tpu.vector_store %arg22[%c0_77, %c0_78], %137 {strides = array<i32>} : memref<2x32xf32, #tpu.memory_space<vmem>>, vector<2x32xf32>,
    return
  }
}

</mosaic_0001>

<bundles_post_ra>
// kernel: eq.23
= control target key start
LH: loop header
LB: loop body
LE: loop exit
PB: predicated region body
PF: predicated region fallthrough
CT: control target
= control target key end

     0   :  { %s37_s8 = smov 16   ;;  %s38_s9 = smov 32   ;;  %vm7_vm0 = vcmask 130048   ;;  %vm13_vm1 = vcmask 523648   ;;  %vm19_vm2 = vcmask 392448   ;;  %vm25_vm3 = vcmask 261248   ;;  %s55_s0 = inlined_call_operand.vmem [shape: s32[4,16], index: 0, kind: input, shape index: {}]   ;;  %s56_s1 = inlined_call_operand.vmem [shape: s32[64], index: 1, kind: output, shape index: {}]  }
   0x1   :  { %v4_v0 = vld [vmem:[%s55_s0] sm:$0xf]  ;;  %s36_s0 = smov 48  }
   0x2   :  { %5 = vst [vmem:[#allocation1] sm:$0xf] %v4_v0 }
   0x9   :  { %v10_v1 = vld [vmem:[#allocation1 + $0x3] sm:$0x1]   ;;  %v22_v2 = vld [vmem:[#allocation1 + $0x1] sm:$0x1]   ;;  %v16_v3 = vld [vmem:[#allocation1 + $0x2] sm:$0x1]  }
   0xa   :  { %11 = vrot.lane.b32.xlu0 %v10_v1, %s36_s0  ;;  %23 = vrot.lane.b32.xlu1 %v22_v2, %s37_s8  ;;  %v6_v4 = vld [vmem:[#allocation1] sm:$0x1]  }
   0xb   :  { %8 = vst.msk [vmem:[#allocation0] sm:$0x1] %vm7_vm0, %v6_v4  }
  0x12   :  { %17 = vrot.lane.b32.xlu0 %v16_v3, %s38_s9 }
  0x7c   :  { %v12_v5 = vpop.permute.xlu0 %11   ;;  %v24_v6 = vpop.permute.xlu1 %23  }
  0x7d   :  { %14 = vst.msk [vmem:[#allocation0] sm:$0x1] %vm13_vm1, %v12_v5  }
  0x84   :  { %v18_v7 = vpop.permute.xlu0 %17  }
  0x85   :  { %20 = vst.msk [vmem:[#allocation0] sm:$0x1] %vm19_vm2, %v18_v7  }
  0x86   :  { %26 = vst.msk [vmem:[#allocation0] sm:$0x1] %vm25_vm3, %v24_v6  }
  0x8d   :  { %v29_v8 = vld [vmem:[#allocation0] sm:$0x1] }
  0x8e   :  { %32 = vst [vmem:[%s56_s1] sm:$0x1] %v29_v8 }

// kernel: tile.37
= control target key start
LH: loop header
LB: loop body
LE: loop exit
PB: predicated region body
PF: predicated region fallthrough
CT: control target
= control target key end

     0   :  { %vm68_vm0 = vcmask 1047556   ;;  %s167_s9 = smov 32   ;;  %s168_s10 = smov 16   ;;  %vm70_vm1 = vcmask 130048   ;;  %vm89_vm2 = vcmask 523648   ;;  %vm110_vm3 = vcmask 392448   ;;  %s259_s0 = inlined_call_operand.vmem [shape: f32[16,4,16], index: 0, kind: input, shape index: {}]   ;;  %s260_s1 = inlined_call_operand.vmem [shape: f32[16,64], index: 1, kind: output, shape index: {}]  }
   0x1   :  { %v152_v0 = vld [vmem:[%s259_s0 + $0x1c] sm:$0xf]  ;;  %v153_v1 = vld [vmem:[%s259_s0 + $0x18] sm:$0xf]  ;;  %v154_v2 = vld [vmem:[%s259_s0 + $0x14] sm:$0xf] }
   0x2   :  { %39 = vst [vmem:[#allocation0 + $0x38] sm:$0xf] %v152_v0  ;;  %v155_v3 = vld [vmem:[%s259_s0 + $0x10] sm:$0xf]  ;;  %v156_v4 = vld [vmem:[%s259_s0 + $0xc] sm:$0xf] }
   0x3   :  { %43 = vst [vmem:[#allocation0 + $0x30] sm:$0xf] %v153_v1  ;;  %v157_v5 = vld [vmem:[%s259_s0 + $0x8] sm:$0xf]  ;;  %v158_v6 = vld [vmem:[%s259_s0 + $0x4] sm:$0xf] }
   0x4   :  { %47 = vst [vmem:[#allocation0 + $0x28] sm:$0xf] %v154_v2  ;;  %v64_v7 = vld [vmem:[%s259_s0] sm:$0xf]  ;;  %v144_v8 = vld [vmem:[%s259_s0 + $0x3c] sm:$0xf] }
   0x5   :  { %51 = vst [vmem:[#allocation0 + $0x20] sm:$0xf] %v155_v3  ;;  %v145_v9 = vld [vmem:[%s259_s0 + $0x38] sm:$0xf]  ;;  %v146_v10 = vld [vmem:[%s259_s0 + $0x34] sm:$0xf] }
   0x6   :  { %55 = vst [vmem:[#allocation0 + $0x18] sm:$0xf] %v156_v4  ;;  %v147_v11 = vld [vmem:[%s259_s0 + $0x30] sm:$0xf]  ;;  %v148_v12 = vld [vmem:[%s259_s0 + $0x2c] sm:$0xf] }
   0x7   :  { %59 = vst [vmem:[#allocation0 + $0x10] sm:$0xf] %v157_v5  ;;  %v149_v13 = vld [vmem:[%s259_s0 + $0x28] sm:$0xf]  ;;  %v150_v15 = vld [vmem:[%s259_s0 + $0x24] sm:$0xf] }
   0x8   :  { %63 = vst [vmem:[#allocation0 + $0x8] sm:$0xf] %v158_v6  ;;  %v151_v17 = vld [vmem:[%s259_s0 + $0x20] sm:$0xf]  ;;  %s166_s0 = smov 48   ;;  %vm131_vm4 = vcmask 261248  }
   0x9   :  { %65 = vst [vmem:[#allocation0] sm:$0xf] %v64_v7 }
   0xa   :  { %7 = vst [vmem:[#allocation0 + $0x78] sm:$0xf] %v144_v8 }
   0xb   :  { %11 = vst [vmem:[#allocation0 + $0x70] sm:$0xf] %v145_v9 }
   0xc   :  { %v84_v14 = vld [vmem:[#allocation0 + $0x3] ss:$8 sm:$0xf0]   ;;  %15 = vst [vmem:[#allocation0 + $0x68] sm:$0xf] %v146_v10 }
   0xd   :  { %v105_v16 = vld [vmem:[#allocation0 + $0x2] ss:$8 sm:$0xf0]   ;;  %19 = vst [vmem:[#allocation0 + $0x60] sm:$0xf] %v147_v11 }
   0xe   :  { %23 = vst [vmem:[#allocation0 + $0x58] sm:$0xf] %v148_v12  ;;  %v126_v18 = vld [vmem:[#allocation0 + $0x1] ss:$8 sm:$0xf0]  }
   0xf   :  { %27 = vst [vmem:[#allocation0 + $0x50] sm:$0xf] %v149_v13  ;;  %v67_v35 = vld [vmem:[#allocation0] ss:$8 sm:$0xf0]  }
  0x10   :  { %v82_v19 = vld [vmem:[#allocation0 + $0x3] ss:$8 sm:$0xf]   ;;  %v103_v20 = vld [vmem:[#allocation0 + $0x2] ss:$8 sm:$0xf]  }
  0x11   :  { %v86_v21 = vsel %vm68_vm0, %v84_v14, %v82_v19  ;;  %v107_v22 = vsel %vm68_vm0, %v105_v16, %v103_v20  ;;  %v124_v23 = vld [vmem:[#allocation0 + $0x1] ss:$8 sm:$0xf]   ;;  %31 = vst [vmem:[#allocation0 + $0x48] sm:$0xf] %v150_v15 }
  0x12   :  { %87 = vrot.lane.b32.xlu0 %v86_v21, %s166_s0  ;;  %108 = vrot.lane.b32.xlu1 %v107_v22, %s167_s9  ;;  %v128_v24 = vsel %vm68_vm0, %v126_v18, %v124_v23  ;;  %35 = vst [vmem:[#allocation0 + $0x40] sm:$0xf] %v151_v17  ;;  %v66_v34 = vld [vmem:[#allocation0] ss:$8 sm:$0xf]  }
  0x13   :  { %129 = vrot.lane.b32.xlu2 %v128_v24, %s168_s10  ;;  %v69_v36 = vsel %vm68_vm0, %v67_v35, %v66_v34 }
  0x14   :  { %v94_v25 = vld [vmem:[#allocation0 + $0x43] ss:$8 sm:$0xf0]   ;;  %v115_v26 = vld [vmem:[#allocation0 + $0x42] ss:$8 sm:$0xf0]  }
  0x15   :  { %v136_v27 = vld [vmem:[#allocation0 + $0x41] ss:$8 sm:$0xf0]   ;;  %71 = vst.msk [vmem:[%s260_s1] sm:$0xff] %vm70_vm1, %v69_v36  }
  0x16   :  { %v75_v38 = vld [vmem:[#allocation0 + $0x40] ss:$8 sm:$0xf0]  }
  0x19   :  { %v92_v28 = vld [vmem:[#allocation0 + $0x43] ss:$8 sm:$0xf]   ;;  %v113_v29 = vld [vmem:[#allocation0 + $0x42] ss:$8 sm:$0xf]  }
  0x1a   :  { %v96_v30 = vsel %vm68_vm0, %v94_v25, %v92_v28  ;;  %v117_v31 = vsel %vm68_vm0, %v115_v26, %v113_v29  ;;  %v134_v32 = vld [vmem:[#allocation0 + $0x41] ss:$8 sm:$0xf]   ;;  %v73_v37 = vld [vmem:[#allocation0 + $0x40] ss:$8 sm:$0xf]  }
  0x1b   :  { %97 = vrot.lane.b32.xlu0 %v96_v30, %s166_s0  ;;  %118 = vrot.lane.b32.xlu1 %v117_v31, %s167_s9  ;;  %v138_v33 = vsel %vm68_vm0, %v136_v27, %v134_v32  ;;  %v77_v40 = vsel %vm68_vm0, %v75_v38, %v73_v37 }
  0x1c   :  { %139 = vrot.lane.b32.xlu2 %v138_v33, %s168_s10  ;;  %159 = vst.msk [vmem:[%s260_s1 + $0x8] sm:$0xff] %vm70_vm1, %v77_v40  }
  0x6d   :  { %v130_v39 = vpop.permute.xlu2 %129  }
  0x76   :  { %v140_v41 = vpop.permute.xlu2 %139  }
  0x84   :  { %v88_v42 = vpop.permute.xlu0 %87   ;;  %v109_v43 = vpop.permute.xlu1 %108  }
  0x85   :  { %90 = vst.msk [vmem:[%s260_s1] sm:$0xff] %vm89_vm2, %v88_v42  }
  0x86   :  { %111 = vst.msk [vmem:[%s260_s1] sm:$0xff] %vm110_vm3, %v109_v43  }
  0x87   :  { %132 = vst.msk [vmem:[%s260_s1] sm:$0xff] %vm131_vm4, %v130_v39  }
  0x8d   :  { %v98_v44 = vpop.permute.xlu0 %97   ;;  %v119_v45 = vpop.permute.xlu1 %118  }
  0x8e   :  { %160 = vst.msk [vmem:[%s260_s1 + $0x8] sm:$0xff] %vm89_vm2, %v98_v44  }
  0x8f   :  { %161 = vst.msk [vmem:[%s260_s1 + $0x8] sm:$0xff] %vm110_vm3, %v119_v45  }
  0x90   :  { %162 = vst.msk [vmem:[%s260_s1 + $0x8] sm:$0xff] %vm131_vm4, %v140_v41  }

// kernel: esm_protein_encoder_forward.1
= control target key start
LH: loop header
LB: loop body
LE: loop exit
PB: predicated region body
PF: predicated region fallthrough
CT: control target
= control target key end

     0   :  { %s1371_s0 = inlined_call_operand.vmem [shape: f32[16,32], index: 0, kind: input, shape index: {}]   ;;  %s1372_s1 = inlined_call_operand.vmem [shape: f32[64,16], index: 1, kind: input, shape index: {}]   ;;  %s1373_s2 = inlined_call_operand.vmem [shape: f32[16,32], index: 2, kind: input, shape index: {}]   ;;  %s1374_s3 = inlined_call_operand.vmem [shape: f32[16,32], index: 3, kind: input, shape index: {}]   ;;  %s1375_s4 = inlined_call_operand.vmem [shape: f32[32,32], index: 4, kind: input, shape index: {}]   ;;  %s1376_s5 = inlined_call_operand.vmem [shape: f32[64,32], index: 5, kind: input, shape index: {}]   ;;  %s1377_s6 = inlined_call_operand.vmem [shape: f32[16,64], index: 6, kind: input, shape index: {}]   ;;  %s1378_s7 = inlined_call_operand.vmem [shape: f32[2,16], index: 7, kind: input, shape index: {}]   ;;  %s1379_s8 = inlined_call_operand.vmem [shape: f32[1,1,32], index: 8, kind: input, shape index: {}]   ;;  %s1380_s9 = inlined_call_operand.vmem [shape: f32[1,1,32], index: 9, kind: input, shape index: {}]   ;;  %s1381_s10 = inlined_call_operand.vmem [shape: f32[1,32,96], index: 10, kind: input, shape index: {}]   ;;  %s1382_s11 = inlined_call_operand.vmem [shape: f32[1,1,96], index: 11, kind: input, shape index: {}]   ;;  %s1383_s12 = inlined_call_operand.vmem [shape: f32[1,32,32], index: 12, kind: input, shape index: {}]   ;;  %s1384_s13 = inlined_call_operand.vmem [shape: f32[1,1,32], index: 13, kind: input, shape index: {}]   ;;  %s1385_s14 = inlined_call_operand.vmem [shape: f32[1,1,32], index: 14, kind: input, shape index: {}]   ;;  %s1386_s15 = inlined_call_operand.vmem [shape: f32[1,1,32], index: 15, kind: input, shape index: {}]   ;;  %s1387_s16 = inlined_call_operand.vmem [shape: f32[1,32,64], index: 16, kind: input, shape index: {}]   ;;  %s1388_s17 = inlined_call_operand.vmem [shape: f32[1,1,64], index: 17, kind: input, shape index: {}]   ;;  %s1389_s18 = inlined_call_operand.vmem [shape: f32[1,64,32], index: 18, kind: input, shape index: {}]   ;;  %s1390_s19 = inlined_call_operand.vmem [shape: f32[1,1,32], index: 19, kind: input, shape index: {}]   ;;  %s1391_s20 = inlined_call_operand.vmem [shape: f32[1,32], index: 20, kind: input, shape index: {}]   ;;  %s1392_s21 = inlined_call_operand.vmem [shape: f32[1,32], index: 21, kind: input, shape index: {}]   ;;  %s1393_s22 = inlined_call_operand.hbm [shape: f32[2,32], index: 22, kind: output, shape index: {}]  }
   0x1   :  { %1401 = sst [smem:[#allocation5_spill]] %s1371_s0 }
   0x2   :  { %1402 = sst [smem:[#allocation6_spill]] %s1372_s1 }
   0x3   :  { %1403 = sst [smem:[#allocation7_spill]] %s1373_s2 }
   0x4   :  { %1404 = sst [smem:[#allocation8_spill]] %s1374_s3 }
   0x5   :  { %1405 = sst [smem:[#allocation9_spill]] %s1375_s4 }
   0x6   :  { %1406 = sst [smem:[#allocation10_spill]] %s1376_s5 }
   0x7   :  { %1407 = sst [smem:[#allocation11_spill]] %s1377_s6 }
   0x8   :  { %s1408_s29 = sld [smem:[#allocation5_spill]]  ;;  %vm111_vm0 = vcmask 261120  }
   0xe   :  { %v1059_v0 = vld [vmem:[%s1408_s29] sm:$0xff] }
   0xf   :  { %v112_v1 = vsel %vm111_vm0, %v1059_v0, 0.0 }
  0x10   :  { %113 = vadd.xlane.f32.xlu0 %v112_v1 }
  0x11   :  { %27 = vsyncpa [#allocation3], 0  ;;  %v1066_v2 = vld [vmem:[%s1408_s29 + $0x8] sm:$0xff]  ;;  %v936_v4 = vmov 32.0   ;;  %v176_v21 = vld [vmem:[%s1381_s10 + $0x18] sm:$0xff]  ;;  %s1409_s2 = sld [smem:[#allocation7_spill]] }
  0x12   :  { %v115_v3 = vsel %vm111_vm0, %v1066_v2, 0.0  ;;  %864 = vrcp.f32 %v936_v4  ;;  %199 = vmatpush.msra.mxu2 %v176_v21  ;;  %v175_v22 = vld [vmem:[%s1381_s10 + $0x10] sm:$0xff]  ;;  %v174_v23 = vld [vmem:[%s1381_s10 + $0x8] sm:$0xff]  ;;  %v173_v24 = vld [vmem:[%s1381_s10] sm:$0xff]  ;;  %s1410_s28 = sld [smem:[#allocation9_spill]]  ;;  %s937_s10 = smov 32  }
  0x13   :  { %v856_v42 = vld [vmem:[%s1379_s8] ss:$0 sm:$0xff]  ;;  %s938_s6 = smov 96   ;;  %s1411_s3 = sld [smem:[#allocation8_spill]]  ;;  %vm381_vm8 = vcmask 130048   ;;  %vm549_vm9 = vcmask 523264  }
  0x14   :  { %200 = vmatpush.msra.mxu2 %v175_v22  ;;  %v857_v46 = vld [vmem:[%s1380_s9] ss:$0 sm:$0xff]  ;;  %s1412_s4 = sld [smem:[#allocation10_spill]]  ;;  %s940_s24 = smov [#allocation2]  }
  0x15   :  { %v858_v58 = vld [vmem:[%s1382_s11] ss:$0 sm:$0xff]  ;;  %s1414_s30 = sld [smem:[#allocation11_spill]] }
  0x16   :  { %201 = vmatpush.msra.mxu2 %v174_v23 }
  0x17   :  { %v1094_v28 = vld [vmem:[%s1409_s2 + $0x8] sm:$0xff]  ;;  %v82_v63 = vld [vmem:[%s1409_s2] sm:$0xff] }
  0x18   :  { %116 = vadd.xlane.f32.xlu0 %v115_v3  ;;  %v865_v5 = vpop.eup %864  ;;  %202 = vmatpush.msra.mxu2 %v173_v24  ;;  %v89_v29 = vld [vmem:[%s1410_s28 + $0x18] sm:$0xff]  ;;  %v88_v30 = vld [vmem:[%s1410_s28 + $0x10] sm:$0xff]  ;;  %v87_v56 = vld [vmem:[%s1410_s28 + $0x8] sm:$0xff] }
  0x19   :  { %v119_v6 = vmul.f32 32.0, %v865_v5  ;;  %vm123_vm1 = vweird.f32 %v865_v5  ;;  %230 = vmatpush.msra.mxu1 %v89_v29  ;;  %v86_v57 = vld [vmem:[%s1410_s28] sm:$0xff]  ;;  %s1413_s28 = sld [smem:[#allocation6_spill]] }
  0x1a   :  { %275 = vmatpush.msrb.mxu2 %v89_v29  ;;  %v84_v4 = vld [vmem:[%s1411_s3] sm:$0xff] }
  0x1b   :  { %v120_v7 = vsub.f32 1.0, %v119_v6  ;;  %231 = vmatpush.msra.mxu1 %v88_v30  ;;  %v1151_v21 = vld [vmem:[%s1412_s4] sm:$0xff] }
  0x1c   :  { %276 = vmatpush.msrb.mxu2 %v88_v30 }
  0x1d   :  { %v121_v8 = vmul.f32 %v865_v5, %v120_v7  ;;  %232 = vmatpush.msra.mxu1 %v87_v56  ;;  %v85_v7 = vld [vmem:[%s1411_s3 + $0x8] sm:$0xff] }
  0x1e   :  { %277 = vmatpush.msrb.mxu2 %v87_v56 }
  0x1f   :  { %v122_v9 = vadd.f32 %v865_v5, %v121_v8  ;;  %233 = vmatpush.msra.mxu1 %v86_v57 }
  0x20   :  { %278 = vmatpush.msrb.mxu2 %v86_v57  ;;  %v75_v57 = vld [vmem:[%s1413_s28 + $0x8] sm:$0xff] }
  0x21   :  { %v1070_v10 = vsel %vm123_vm1, %v865_v5, %v122_v9 }
  0x2c   :  { %249 = vrot.lane.b32.xlu0 %v1094_v28, %s937_s10 }
  0x83   :  { %v114_v11 = vpop.xlane.xlu0 %113 }
  0x84   :  { %v125_v12 = vmul.f32 %v1070_v10, %v114_v11 }
  0x86   :  { %v127_v13 = vsub.f32 %v1059_v0, %v125_v12 }
  0x88   :  { %v129_v14 = vmul.f32 %v127_v13, %v127_v13 }
  0x8a   :  { %v131_v15 = vsel %vm111_vm0, %v129_v14, 0.0 }
  0x8b   :  { %132 = vadd.xlane.f32.xlu1 %v131_v15  ;;  %v117_v16 = vpop.xlane.xlu0 %116 }
  0x8c   :  { %v126_v17 = vmul.f32 %v1070_v10, %v117_v16 }
  0x8e   :  { %v128_v18 = vsub.f32 %v1066_v2, %v126_v17 }
  0x90   :  { %v130_v19 = vmul.f32 %v128_v18, %v128_v18 }
  0x92   :  { %v134_v20 = vsel %vm111_vm0, %v130_v19, 0.0 }
  0x93   :  { %135 = vadd.xlane.f32.xlu1 %v134_v20 }
  0x9e   :  { %v250_v15 = vpop.permute.xlu0 %249 }
  0xfe   :  { %v133_v25 = vpop.xlane.xlu1 %132 }
  0xff   :  { %v137_v26 = vmul.f32 %v133_v25, %v1070_v10  ;;  %v101_v25 = vmul.f32 0.35355338, %v1151_v21 }
 0x101   :  { %v139_v27 = vadd.f32 1e-05, %v137_v26 }
 0x103   :  { %866 = vrsqrt.f32 %v139_v27  ;;  %vm147_vm3 = vweird.f32 %v139_v27 }
 0x106   :  { %v136_v31 = vpop.xlane.xlu1 %135 }
 0x107   :  { %v138_v32 = vmul.f32 %v136_v31, %v1070_v10  ;;  %v1160_v31 = vld [vmem:[%s1412_s4 + $0x8] sm:$0xff] }
 0x109   :  { %v867_v33 = vpop.eup %866  ;;  %v140_v34 = vadd.f32 1e-05, %v138_v32 }
 0x10a   :  { %v142_v35 = vmul.f32 %v867_v33, %v139_v27  ;;  %vm148_vm2 = vweird.f32 %v867_v33 }
 0x10b   :  { %868 = vrsqrt.f32 %v140_v34  ;;  %vm149_vm4 = vmor %vm147_vm3, %vm148_vm2  ;;  %vm157_vm6 = vweird.f32 %v140_v34 }
 0x10c   :  { %v143_v36 = vmul.f32 %v867_v33, %v142_v35 }
 0x10e   :  { %v144_v37 = vmul.f32 0.5, %v143_v36  ;;  %v1169_v36 = vld [vmem:[%s1412_s4 + $0x10] sm:$0xff] }
 0x110   :  { %v145_v38 = vsub.f32 1.5, %v144_v37  ;;  %v103_v37 = vmul.f32 0.35355338, %v1169_v36 }
 0x111   :  { %v869_v39 = vpop.eup %868 }
 0x112   :  { %v146_v40 = vmul.f32 %v867_v33, %v145_v38  ;;  %v152_v41 = vmul.f32 %v869_v39, %v140_v34  ;;  %vm158_vm5 = vweird.f32 %v869_v39  ;;  %v102_v34 = vmul.f32 0.35355338, %v1160_v31 }
 0x113   :  { %vm159_vm7 = vmor %vm157_vm6, %vm158_vm5 }
 0x114   :  { %v150_v43 = vsel %vm149_vm4, %v867_v33, %v146_v40  ;;  %v153_v44 = vmul.f32 %v869_v39, %v152_v41  ;;  %v1183_v41 = vld [vmem:[%s1412_s4 + $0x20] sm:$0xff] }
 0x115   :  { %v161_v45 = vmul.f32 %v150_v43, %v127_v13 }
 0x116   :  { %v154_v47 = vmul.f32 0.5, %v153_v44  ;;  %v1190_v44 = vld [vmem:[%s1412_s4 + $0x28] sm:$0xff] }
 0x117   :  { %v166_v48 = vmul.f32 %v856_v42, %v161_v45  ;;  %v106_v45 = vmul.f32 0.35355338, %v1190_v44 }
 0x118   :  { %v155_v49 = vsub.f32 1.5, %v154_v47  ;;  %v1197_v47 = vld [vmem:[%s1412_s4 + $0x30] sm:$0xff] }
 0x119   :  { %v171_v50 = vadd.f32 %v857_v46, %v166_v48  ;;  %v107_v48 = vmul.f32 0.35355338, %v1197_v47 }
 0x11a   :  { %v156_v51 = vmul.f32 %v869_v39, %v155_v49 }
 0x11b   :  { %813 = vmatmul.msk.f32.vlgmr.msra.gmra.mxu2 %vm111_vm0, %v171_v50  ;;  %v1204_v50 = vld [vmem:[%s1412_s4 + $0x38] sm:$0xff] }
 0x11c   :  { %v160_v52 = vsel %vm159_vm7, %v869_v39, %v156_v51  ;;  %v108_v51 = vmul.f32 0.35355338, %v1204_v50 }
 0x11d   :  { %v162_v53 = vmul.f32 %v160_v52, %v128_v18 }
 0x11f   :  { %v167_v54 = vmul.f32 %v856_v42, %v162_v53  ;;  %v105_v42 = vmul.f32 0.35355338, %v1183_v41  ;;  %v74_v53 = vld [vmem:[%s1413_s28] sm:$0xff] }
 0x121   :  { %v172_v55 = vadd.f32 %v857_v46, %v167_v54 }
 0x123   :  { %814 = vmatmul.msk.f32.gmra.mxu2 %vm111_vm0, %v172_v55 }
 0x19e   :  { %v204_v59 = vpop.f32.mrf.mxu2 }
 0x19f   :  { %v1122_v60 = vadd.f32 %v858_v58, %v204_v59 }
 0x1a1   :  { %255 = vrot.lane.b32.xlu2 %v1122_v60, %s938_s6  ;;  %815 = vmatmul.msk.f32.vlgmr.msra.gmra.mxu1 %vm111_vm0, %v1122_v60  ;;  %v210_v22 = vmul.f32 %v1122_v60, %v82_v63 }
 0x1a6   :  { %v207_v61 = vpop.f32.mrf.mxu2 }
 0x1a7   :  { %v1127_v62 = vadd.f32 %v858_v58, %v207_v61 }
 0x1a9   :  { %257 = vrot.lane.b32.xlu2 %v1127_v62, %s938_s6  ;;  %816 = vmatmul.msk.f32.gmra.mxu1 %vm111_vm0, %v1127_v62  ;;  %v254_v16 = vmul.f32 %v250_v15, %v1127_v62  ;;  %v211_v32 = vmul.f32 %v1127_v62, %v1094_v28  ;;  %v1176_v28 = vld [vmem:[%s1412_s4 + $0x18] sm:$0xff] }
 0x1aa   :  { %v104_v39 = vmul.f32 0.35355338, %v1176_v28 }
 0x1b1   :  { %247 = vrot.lane.b32.xlu2 %v82_v63, %s937_s10  ;;  %v76_v63 = vld [vmem:[%s1413_s28 + $0x10] sm:$0xff] }
 0x1fb   :  { %v256_v1 = vpop.permute.xlu2 %255 }
 0x1fc   :  { %817 = vmatmul.msk.f32.vlgmr.msrb.gmra.mxu2 %vm111_vm0, %v256_v1 }
 0x203   :  { %v258_v3 = vpop.permute.xlu2 %257 }
 0x204   :  { %818 = vmatmul.msk.f32.gmra.mxu2 %vm111_vm0, %v258_v3 }
 0x20b   :  { %v248_v11 = vpop.permute.xlu2 %247 }
 0x20c   :  { %v253_v12 = vmul.f32 %v248_v11, %v1122_v60 }
 0x21e   :  { %v235_v19 = vpop.f32.mrf.mxu1 }
 0x21f   :  { %v241_v20 = vmul.f32 %v235_v19, %v84_v4 }
 0x221   :  { %v243_v24 = vadd.f32 %v241_v20, %v210_v22 }
 0x223   :  { %v298_v30 = vmul.f32 %v243_v24, %v101_v25  ;;  %v300_v38 = vmul.f32 %v243_v24, %v103_v37  ;;  %v302_v43 = vmul.f32 %v243_v24, %v105_v42  ;;  %v304_v49 = vmul.f32 %v243_v24, %v107_v48 }
 0x226   :  { %v238_v26 = vpop.f32.mrf.mxu1 }
 0x227   :  { %v242_v29 = vmul.f32 %v238_v26, %v85_v7 }
 0x229   :  { %v244_v33 = vadd.f32 %v242_v29, %v211_v32 }
 0x22b   :  { %v299_v35 = vmul.f32 %v244_v33, %v102_v34  ;;  %v301_v40 = vmul.f32 %v244_v33, %v104_v39  ;;  %v303_v46 = vmul.f32 %v244_v33, %v106_v45  ;;  %v305_v52 = vmul.f32 %v244_v33, %v108_v51 }
 0x27f   :  { %v280_v5 = vpop.f32.mrf.mxu2 }
 0x280   :  { %v286_v6 = vmul.f32 %v280_v5, %v84_v4  ;;  %v77_v5 = vld [vmem:[%s1413_s28 + $0x18] sm:$0xff] }
 0x282   :  { %290 = vrot.lane.b32.xlu2 %v286_v6, %s937_s10 }
 0x287   :  { %v283_v8 = vpop.f32.mrf.mxu2 }
 0x288   :  { %v287_v9 = vmul.f32 %v283_v8, %v85_v7 }
 0x28a   :  { %292 = vrot.lane.b32.xlu1 %v287_v9, %s937_s10  ;;  %v78_v9 = vld [vmem:[%s1413_s28 + $0x20] sm:$0xff] }
 0x2dc   :  { %v291_v13 = vpop.permute.xlu2 %290 }
 0x2dd   :  { %v296_v14 = vadd.f32 %v291_v13, %v253_v12 }
 0x2df   :  { %308 = vrot.lane.b32.xlu0 %v296_v14, %s938_s6  ;;  %v79_v14 = vld [vmem:[%s1413_s28 + $0x28] sm:$0xff] }
 0x2fc   :  { %v293_v17 = vpop.permute.xlu1 %292 }
 0x2fd   :  { %v297_v18 = vadd.f32 %v293_v17, %v254_v16 }
 0x2ff   :  { %310 = vrot.lane.b32.xlu2 %v297_v18, %s938_s6  ;;  %v80_v18 = vld [vmem:[%s1413_s28 + $0x30] sm:$0xff]  ;;  %s939_s6 = smov 64  }
 0x351   :  { %v309_v27 = vpop.permute.xlu0 %308 }
 0x359   :  { %v311_v23 = vpop.permute.xlu2 %310 }
 0x35a   :  { %819 = vmatpush.xpose.msk.msra.mxu3 %vm111_vm0, %v311_v23  ;;  %v81_v23 = vld [vmem:[%s1413_s28 + $0x38] sm:$0xff] }
 0x35e   :  { %820 = vmatpush.xpose.msk.msra.mxu3 %vm111_vm0, %v309_v27  ;;  %v851_v27 = vpack.i.bf16 %v1122_v60, %v1127_v62 }
 0x361   :  { %821 = vmatmul.msk.f32.vlgmr.msra.gmra.mxu3 %vm111_vm0, %v298_v30 }
 0x369   :  { %822 = vmatmul.msk.f32.gmra.mxu3 %vm111_vm0, %v299_v35 }
 0x371   :  { %823 = vmatmul.msk.f32.gmra.mxu3 %vm111_vm0, %v300_v38 }
 0x379   :  { %824 = vmatmul.msk.f32.gmra.mxu3 %vm111_vm0, %v301_v40 }
 0x381   :  { %825 = vmatmul.msk.f32.gmra.mxu3 %vm111_vm0, %v302_v43 }
 0x389   :  { %826 = vmatmul.msk.f32.gmra.mxu3 %vm111_vm0, %v303_v46 }
 0x391   :  { %827 = vmatmul.msk.f32.gmra.mxu3 %vm111_vm0, %v304_v49 }
 0x399   :  { %828 = vmatmul.msk.f32.gmra.mxu3 %vm111_vm0, %v305_v52 }
 0x3e4   :  { %v357_v54 = vpop.f32.mrf.mxu3 }
 0x3e5   :  { %v358_v55 = vadd.f32 %v357_v54, %v74_v53 }
 0x3e7   :  { %v382_v56 = vsel %vm381_vm8, %v358_v55, -inf }
 0x3e8   :  { %383 = vmax.xlane.f32.xlu2 %v382_v56 }
 0x3ec   :  { %v360_v58 = vpop.f32.mrf.mxu3 }
 0x3ed   :  { %v361_v59 = vadd.f32 %v360_v58, %v75_v57 }
 0x3ef   :  { %v385_v61 = vsel %vm381_vm8, %v361_v59, -inf }
 0x3f0   :  { %386 = vmax.xlane.f32.xlu1 %v385_v61 }
 0x3f4   :  { %v363_v1 = vpop.f32.mrf.mxu3 }
 0x3f5   :  { %v364_v3 = vadd.f32 %v363_v1, %v76_v63 }
 0x3f7   :  { %v388_v4 = vsel %vm381_vm8, %v364_v3, -inf }
 0x3f8   :  { %389 = vmax.xlane.f32.xlu0 %v388_v4 }
 0x3fc   :  { %v366_v6 = vpop.f32.mrf.mxu3 }
 0x3fd   :  { %v367_v7 = vadd.f32 %v366_v6, %v77_v5 }
 0x3ff   :  { %v391_v8 = vsel %vm381_vm8, %v367_v7, -inf }
 0x400   :  { %392 = vmax.xlane.f32.xlu2 %v391_v8 }
 0x404   :  { %v369_v11 = vpop.f32.mrf.mxu3 }
 0x405   :  { %v370_v12 = vadd.f32 %v369_v11, %v78_v9 }
 0x407   :  { %v394_v13 = vsel %vm381_vm8, %v370_v12, -inf }
 0x408   :  { %395 = vmax.xlane.f32.xlu1 %v394_v13 }
 0x40c   :  { %v372_v15 = vpop.f32.mrf.mxu3 }
 0x40d   :  { %v373_v16 = vadd.f32 %v372_v15, %v79_v14 }
 0x40f   :  { %v397_v17 = vsel %vm381_vm8, %v373_v16, -inf }
 0x410   :  { %398 = vmax.xlane.f32.xlu0 %v397_v17 }
 0x414   :  { %v375_v19 = vpop.f32.mrf.mxu3 }
 0x415   :  { %v376_v20 = vadd.f32 %v375_v19, %v80_v18 }
 0x417   :  { %v400_v22 = vsel %vm381_vm8, %v376_v20, -inf }
 0x418   :  { %401 = vmax.xlane.f32.xlu2 %v400_v22 }
 0x41c   :  { %v378_v24 = vpop.f32.mrf.mxu3 }
 0x41d   :  { %v379_v25 = vadd.f32 %v378_v24, %v81_v23 }
 0x41f   :  { %v403_v26 = vsel %vm381_vm8, %v379_v25, -inf }
 0x420   :  { %404 = vmax.xlane.f32.xlu0 %v403_v26 }
 0x430   :  { %852 = vrot.lane.b32.xlu2 %v851_v27, %s939_s6  ;;  %s802_s6 = sshll.u32 %s940_s24, 4  ;;  %s803_s6 = int_to_ptr.vmem [resolvable:$true] %s802_s6 }
 0x45b   :  { %v384_v29 = vpop.xlane.xlu2 %383 }
 0x45c   :  { %v406_v30 = vsub.f32 %v358_v55, %v384_v29 }
 0x45e   :  { %v414_v32 = vmul.f32 1.442695, %v406_v30 }
 0x460   :  { %870 = vpow2.f32 %v414_v32 }
 0x463   :  { %v387_v33 = vpop.xlane.xlu1 %386 }
 0x464   :  { %v407_v34 = vsub.f32 %v361_v59, %v387_v33 }
 0x466   :  { %v871_v35 = vpop.eup %870  ;;  %v416_v37 = vmul.f32 1.442695, %v407_v34 }
 0x467   :  { %v430_v38 = vsel %vm381_vm8, %v871_v35, 0.0 }
 0x468   :  { %872 = vpow2.f32 %v416_v37  ;;  %431 = vadd.xlane.f32.xlu1 %v430_v38 }
 0x46b   :  { %v390_v39 = vpop.xlane.xlu0 %389 }
 0x46c   :  { %v408_v40 = vsub.f32 %v364_v3, %v390_v39 }
 0x46e   :  { %v873_v42 = vpop.eup %872  ;;  %v418_v43 = vmul.f32 1.442695, %v408_v40 }
 0x46f   :  { %v433_v60 = vsel %vm381_vm8, %v873_v42, 0.0 }
 0x470   :  { %874 = vpow2.f32 %v418_v43  ;;  %434 = vadd.xlane.f32.xlu1 %v433_v60 }
 0x473   :  { %v393_v62 = vpop.xlane.xlu2 %392 }
 0x474   :  { %v409_v45 = vsub.f32 %v367_v7, %v393_v62 }
 0x476   :  { %v875_v46 = vpop.eup %874  ;;  %v420_v48 = vmul.f32 1.442695, %v409_v45 }
 0x477   :  { %v436_v49 = vsel %vm381_vm8, %v875_v46, 0.0 }
 0x478   :  { %876 = vpow2.f32 %v420_v48  ;;  %437 = vadd.xlane.f32.xlu0 %v436_v49 }
 0x47b   :  { %v396_v51 = vpop.xlane.xlu1 %395 }
 0x47c   :  { %v410_v52 = vsub.f32 %v370_v12, %v396_v51 }
 0x47e   :  { %v877_v53 = vpop.eup %876  ;;  %v422_v54 = vmul.f32 1.442695, %v410_v52 }
 0x47f   :  { %v439_v55 = vsel %vm381_vm8, %v877_v53, 0.0 }
 0x480   :  { %878 = vpow2.f32 %v422_v54  ;;  %440 = vadd.xlane.f32.xlu1 %v439_v55  ;;  %v582_v54 = vld [vmem:[%s1383_s12 + $0x18] sm:$0xff]  ;;  %v581_v55 = vld [vmem:[%s1383_s12 + $0x10] sm:$0xff] }
 0x481   :  { %605 = vmatpush.msra.mxu2 %v582_v54 }
 0x483   :  { %v399_v56 = vpop.xlane.xlu0 %398  ;;  %606 = vmatpush.msra.mxu2 %v581_v55 }
 0x484   :  { %v411_v57 = vsub.f32 %v373_v16, %v399_v56  ;;  %v580_v56 = vld [vmem:[%s1383_s12 + $0x8] sm:$0xff] }
 0x485   :  { %607 = vmatpush.msra.mxu2 %v580_v56 }
 0x486   :  { %v879_v58 = vpop.eup %878  ;;  %v424_v59 = vmul.f32 1.442695, %v411_v57 }
 0x487   :  { %v442_v61 = vsel %vm381_vm8, %v879_v58, 0.0 }
 0x488   :  { %880 = vpow2.f32 %v424_v59  ;;  %443 = vadd.xlane.f32.xlu0 %v442_v61 }
 0x48b   :  { %v402_v63 = vpop.xlane.xlu2 %401 }
 0x48c   :  { %v412_v1 = vsub.f32 %v376_v20, %v402_v63 }
 0x48e   :  { %v881_v3 = vpop.eup %880  ;;  %v426_v4 = vmul.f32 1.442695, %v412_v1 }
 0x48f   :  { %v445_v5 = vsel %vm381_vm8, %v881_v3, 0.0 }
 0x490   :  { %882 = vpow2.f32 %v426_v4  ;;  %446 = vadd.xlane.f32.xlu1 %v445_v5 }
 0x493   :  { %v405_v6 = vpop.xlane.xlu0 %404  ;;  %v853_v7 = vpop.permute.xlu2 %852 }
 0x494   :  { %v413_v8 = vsub.f32 %v379_v25, %v405_v6  ;;  %v854_v9 = vunpack.i.l.bf16 %v853_v7  ;;  %v855_v13 = vunpack.i.h.bf16 %v853_v7 }
 0x496   :  { %v883_v11 = vpop.eup %882  ;;  %v428_v12 = vmul.f32 1.442695, %v413_v8  ;;  %514 = vmatpush.msra.mxu0 %v854_v9 }
 0x497   :  { %v448_v14 = vsel %vm381_vm8, %v883_v11, 0.0 }
 0x498   :  { %884 = vpow2.f32 %v428_v12  ;;  %449 = vadd.xlane.f32.xlu0 %v448_v14  ;;  %515 = vmatpush.msra.mxu0 %v855_v13 }
 0x49e   :  { %v885_v15 = vpop.eup %884 }
 0x49f   :  { %v451_v16 = vsel %vm381_vm8, %v885_v15, 0.0 }
 0x4a0   :  { %452 = vadd.xlane.f32.xlu2 %v451_v16 }
 0x4db   :  { %v432_v17 = vpop.xlane.xlu1 %431 }
 0x4dc   :  { %886 = vrcp.f32 %v432_v17 }
 0x4e2   :  { %v887_v18 = vpop.eup %886 }
 0x4e3   :  { %v435_v19 = vpop.xlane.xlu1 %434  ;;  %v462_v20 = vmul.f32 %v887_v18, %v871_v35 }
 0x4e4   :  { %888 = vrcp.f32 %v435_v19 }
 0x4e5   :  { %829 = vmatmul.msk.f32.vlgmr.msra.gmra.mxu0 %vm381_vm8, %v462_v20 }
 0x4ea   :  { %v889_v22 = vpop.eup %888 }
 0x4eb   :  { %v438_v23 = vpop.xlane.xlu0 %437  ;;  %v463_v24 = vmul.f32 %v889_v22, %v873_v42  ;;  %v677_v22 = vld [vmem:[%s1387_s16 + $0x18] sm:$0xff] }
 0x4ec   :  { %890 = vrcp.f32 %v438_v23  ;;  %v676_v23 = vld [vmem:[%s1387_s16 + $0x10] sm:$0xff] }
 0x4ed   :  { %830 = vmatmul.msk.f32.gmra.mxu0 %vm381_vm8, %v463_v24  ;;  %v675_v24 = vld [vmem:[%s1387_s16 + $0x8] sm:$0xff] }
 0x4f2   :  { %v891_v25 = vpop.eup %890 }
 0x4f3   :  { %v441_v26 = vpop.xlane.xlu1 %440  ;;  %v464_v27 = vmul.f32 %v891_v25, %v875_v46  ;;  %v674_v25 = vld [vmem:[%s1387_s16] sm:$0xff] }
 0x4f4   :  { %892 = vrcp.f32 %v441_v26 }
 0x4f5   :  { %831 = vmatmul.msk.f32.gmra.mxu0 %vm381_vm8, %v464_v27 }
 0x4fa   :  { %v893_v29 = vpop.eup %892 }
 0x4fb   :  { %v444_v30 = vpop.xlane.xlu0 %443  ;;  %v465_v32 = vmul.f32 %v893_v29, %v877_v53 }
 0x4fc   :  { %894 = vrcp.f32 %v444_v30 }
 0x4fd   :  { %832 = vmatmul.msk.f32.gmra.mxu0 %vm381_vm8, %v465_v32 }
 0x502   :  { %v895_v33 = vpop.eup %894 }
 0x503   :  { %v447_v34 = vpop.xlane.xlu1 %446  ;;  %v466_v35 = vmul.f32 %v895_v33, %v879_v58 }
 0x504   :  { %896 = vrcp.f32 %v447_v34 }
 0x505   :  { %833 = vmatmul.msk.f32.gmra.mxu0 %vm381_vm8, %v466_v35 }
 0x50a   :  { %v897_v37 = vpop.eup %896 }
 0x50b   :  { %v450_v38 = vpop.xlane.xlu0 %449  ;;  %v467_v39 = vmul.f32 %v897_v37, %v881_v3 }
 0x50c   :  { %898 = vrcp.f32 %v450_v38 }
 0x50d   :  { %834 = vmatmul.msk.f32.gmra.mxu0 %vm381_vm8, %v467_v39 }
 0x512   :  { %v899_v40 = vpop.eup %898 }
 0x513   :  { %v453_v42 = vpop.xlane.xlu2 %452  ;;  %v468_v43 = vmul.f32 %v899_v40, %v883_v11 }
 0x514   :  { %900 = vrcp.f32 %v453_v42 }
 0x515   :  { %835 = vmatmul.msk.f32.gmra.mxu0 %vm381_vm8, %v468_v43 }
 0x51a   :  { %v901_v60 = vpop.eup %900 }
 0x51b   :  { %v469_v62 = vmul.f32 %v901_v60, %v885_v15  ;;  %v860_v60 = vld [vmem:[%s1385_s14] ss:$0 sm:$0xff] }
 0x51d   :  { %836 = vmatmul.msk.f32.gmra.mxu0 %vm381_vm8, %v469_v62 }
 0x562   :  { %v517_v45 = vpop.f32.mrf.mxu0 }
 0x56a   :  { %v520_v46 = vpop.f32.mrf.mxu0 }
 0x56b   :  { %v542_v4 = vmul.f32 %v520_v46, %v1160_v31  ;;  %v579_v31 = vld [vmem:[%s1383_s12] sm:$0xff] }
 0x56c   :  { %608 = vmatpush.msra.mxu2 %v579_v31  ;;  %v861_v46 = vld [vmem:[%s1386_s15] ss:$0 sm:$0xff] }
 0x572   :  { %v523_v48 = vpop.f32.mrf.mxu0 }
 0x573   :  { %v543_v3 = vmul.f32 %v523_v48, %v1169_v36 }
 0x57a   :  { %v526_v49 = vpop.f32.mrf.mxu0 }
 0x57b   :  { %v544_v1 = vmul.f32 %v526_v49, %v1176_v28  ;;  %v99_v28 = vld [vmem:[%s1414_s30 + $0x8] sm:$0xff] }
 0x582   :  { %v529_v51 = vpop.f32.mrf.mxu0 }
 0x583   :  { %v545_v63 = vmul.f32 %v529_v51, %v1183_v41  ;;  %v859_v41 = vld [vmem:[%s1384_s13] ss:$0 sm:$0xff] }
 0x58a   :  { %v532_v52 = vpop.f32.mrf.mxu0 }
 0x58b   :  { %v546_v61 = vmul.f32 %v532_v52, %v1190_v44  ;;  %v98_v44 = vld [vmem:[%s1414_s30] sm:$0xff] }
 0x592   :  { %v535_v53 = vpop.f32.mrf.mxu0 }
 0x593   :  { %v547_v59 = vmul.f32 %v535_v53, %v1197_v47 }
 0x59a   :  { %v538_v57 = vpop.f32.mrf.mxu0 }
 0x59b   :  { %v548_v58 = vmul.f32 %v538_v57, %v1204_v50  ;;  %v541_v50 = vmul.f32 %v517_v45, %v1151_v21 }
 0x59d   :  { %564 = vmatpush.msrb.mxu1 %v548_v58  ;;  %v736_v58 = vld [vmem:[%s1389_s18 + $0x38] sm:$0xff] }
 0x59e   :  { %755 = vmatpush.msrb.mxu2 %v736_v58 }
 0x59f   :  { %565 = vmatpush.msrb.mxu1 %v547_v59  ;;  %v735_v59 = vld [vmem:[%s1389_s18 + $0x30] sm:$0xff] }
 0x5a0   :  { %756 = vmatpush.msrb.mxu2 %v735_v59 }
 0x5a1   :  { %566 = vmatpush.msrb.mxu1 %v546_v61  ;;  %v734_v61 = vld [vmem:[%s1389_s18 + $0x28] sm:$0xff] }
 0x5a2   :  { %757 = vmatpush.msrb.mxu2 %v734_v61 }
 0x5a3   :  { %567 = vmatpush.msrb.mxu1 %v545_v63  ;;  %v733_v63 = vld [vmem:[%s1389_s18 + $0x20] sm:$0xff] }
 0x5a4   :  { %758 = vmatpush.msrb.mxu2 %v733_v63 }
 0x5a5   :  { %568 = vmatpush.msrb.mxu1 %v544_v1  ;;  %v732_v1 = vld [vmem:[%s1389_s18 + $0x18] sm:$0xff] }
 0x5a6   :  { %759 = vmatpush.msrb.mxu2 %v732_v1 }
 0x5a7   :  { %569 = vmatpush.msrb.mxu1 %v543_v3  ;;  %v731_v3 = vld [vmem:[%s1389_s18 + $0x10] sm:$0xff] }
 0x5a8   :  { %760 = vmatpush.msrb.mxu2 %v731_v3 }
 0x5a9   :  { %570 = vmatpush.msrb.mxu1 %v542_v4  ;;  %v730_v4 = vld [vmem:[%s1389_s18 + $0x8] sm:$0xff] }
 0x5aa   :  { %761 = vmatpush.msrb.mxu2 %v730_v4 }
 0x5ab   :  { %571 = vmatpush.msrb.mxu1 %v541_v50  ;;  %v729_v50 = vld [vmem:[%s1389_s18] sm:$0xff] }
 0x5ac   :  { %837 = vmatmul.msk.f32.vlgmr.msrb.gmra.mxu1 %vm549_vm9, %v98_v44  ;;  %762 = vmatpush.msrb.mxu2 %v729_v50  ;;  %v862_v44 = vld [vmem:[%s1388_s17] ss:$0 sm:$0xff] }
 0x5ad   :  { %700 = vmatpush.msra.mxu1 %v677_v22 }
 0x5af   :  { %701 = vmatpush.msra.mxu1 %v676_v23 }
 0x5b1   :  { %702 = vmatpush.msra.mxu1 %v675_v24  ;;  %v863_v24 = vld [vmem:[%s1390_s19] ss:$0 sm:$0xff]  ;;  %s804_s19 = sshll.u32 %s1393_s22, 4  ;;  %s805_s19 = int_to_ptr.hbm [resolvable:$true] %s804_s19 }
 0x5b3   :  { %703 = vmatpush.msra.mxu1 %v674_v25 }
 0x5b4   :  { %838 = vmatmul.msk.f32.gmra.mxu1 %vm549_vm9, %v99_v28 }
 0x629   :  { %v573_v21 = vpop.f32.mrf.mxu1 }
 0x62a   :  { %839 = vmatmul.msk.f32.vlgmr.msra.gmra.mxu2 %vm111_vm0, %v573_v21 }
 0x631   :  { %v576_v36 = vpop.f32.mrf.mxu1 }
 0x632   :  { %840 = vmatmul.msk.f32.gmra.mxu2 %vm111_vm0, %v576_v36 }
 0x6ad   :  { %v610_v47 = vpop.f32.mrf.mxu2 }
 0x6ae   :  { %v611_v5 = vadd.f32 %v859_v41, %v610_v47 }
 0x6b0   :  { %v1293_v6 = vadd.f32 %v611_v5, %v1059_v0 }
 0x6b2   :  { %v620_v7 = vsel %vm111_vm0, %v1293_v6, 0.0 }
 0x6b3   :  { %621 = vadd.xlane.f32.xlu1 %v620_v7 }
 0x6b5   :  { %v613_v8 = vpop.f32.mrf.mxu2 }
 0x6b6   :  { %v614_v9 = vadd.f32 %v859_v41, %v613_v8 }
 0x6b8   :  { %v1298_v11 = vadd.f32 %v614_v9, %v1066_v2 }
 0x6ba   :  { %v623_v12 = vsel %vm111_vm0, %v1298_v11, 0.0 }
 0x6bb   :  { %624 = vadd.xlane.f32.xlu0 %v623_v12 }
 0x726   :  { %v622_v13 = vpop.xlane.xlu1 %621 }
 0x727   :  { %v626_v14 = vmul.f32 %v622_v13, %v1070_v10 }
 0x729   :  { %v628_v15 = vsub.f32 %v1293_v6, %v626_v14 }
 0x72b   :  { %v630_v0 = vmul.f32 %v628_v15, %v628_v15 }
 0x72d   :  { %v632_v16 = vsel %vm111_vm0, %v630_v0, 0.0 }
 0x72e   :  { %633 = vadd.xlane.f32.xlu1 %v632_v16  ;;  %v625_v17 = vpop.xlane.xlu0 %624 }
 0x72f   :  { %v627_v18 = vmul.f32 %v625_v17, %v1070_v10 }
 0x731   :  { %v629_v19 = vsub.f32 %v1298_v11, %v627_v18 }
 0x733   :  { %v631_v2 = vmul.f32 %v629_v19, %v629_v19 }
 0x735   :  { %v635_v20 = vsel %vm111_vm0, %v631_v2, 0.0 }
 0x736   :  { %636 = vadd.xlane.f32.xlu0 %v635_v20 }
 0x7a1   :  { %v634_v26 = vpop.xlane.xlu1 %633 }
 0x7a2   :  { %v638_v27 = vmul.f32 %v634_v26, %v1070_v10 }
 0x7a4   :  { %v640_v29 = vadd.f32 1e-05, %v638_v27 }
 0x7a6   :  { %902 = vrsqrt.f32 %v640_v29  ;;  %vm648_vm11 = vweird.f32 %v640_v29 }
 0x7a9   :  { %v637_v30 = vpop.xlane.xlu0 %636 }
 0x7aa   :  { %v639_v32 = vmul.f32 %v637_v30, %v1070_v10 }
 0x7ac   :  { %v903_v33 = vpop.eup %902  ;;  %v641_v34 = vadd.f32 1e-05, %v639_v32  ;;  %v100_v32 = vld [vmem:[%s1378_s7] sm:$0x3] }
 0x7ad   :  { %v643_v35 = vmul.f32 %v903_v33, %v640_v29  ;;  %vm649_vm10 = vweird.f32 %v903_v33 }
 0x7ae   :  { %904 = vrsqrt.f32 %v641_v34  ;;  %vm650_vm12 = vmor %vm648_vm11, %vm649_vm10  ;;  %vm658_vm14 = vweird.f32 %v641_v34 }
 0x7af   :  { %v644_v37 = vmul.f32 %v903_v33, %v643_v35 }
 0x7b1   :  { %v645_v38 = vmul.f32 0.5, %v644_v37 }
 0x7b3   :  { %v646_v39 = vsub.f32 1.5, %v645_v38 }
 0x7b4   :  { %v905_v40 = vpop.eup %904 }
 0x7b5   :  { %v647_v42 = vmul.f32 %v903_v33, %v646_v39  ;;  %v653_v43 = vmul.f32 %v905_v40, %v641_v34  ;;  %vm659_vm13 = vweird.f32 %v905_v40 }
 0x7b6   :  { %vm660_vm15 = vmor %vm658_vm14, %vm659_vm13 }
 0x7b7   :  { %v651_v62 = vsel %vm650_vm12, %v903_v33, %v647_v42  ;;  %v654_v45 = vmul.f32 %v905_v40, %v653_v43 }
 0x7b8   :  { %v662_v10 = vmul.f32 %v651_v62, %v628_v15 }
 0x7b9   :  { %v655_v48 = vmul.f32 0.5, %v654_v45 }
 0x7ba   :  { %v667_v49 = vmul.f32 %v860_v60, %v662_v10 }
 0x7bb   :  { %v656_v51 = vsub.f32 1.5, %v655_v48 }
 0x7bc   :  { %v672_v52 = vadd.f32 %v861_v46, %v667_v49 }
 0x7bd   :  { %v657_v53 = vmul.f32 %v905_v40, %v656_v51 }
 0x7be   :  { %841 = vmatmul.msk.f32.vlgmr.msra.gmra.mxu1 %vm111_vm0, %v672_v52 }
 0x7bf   :  { %v661_v54 = vsel %vm660_vm15, %v905_v40, %v657_v53 }
 0x7c0   :  { %v663_v55 = vmul.f32 %v661_v54, %v629_v19 }
 0x7c2   :  { %v668_v56 = vmul.f32 %v860_v60, %v663_v55 }
 0x7c4   :  { %v673_v57 = vadd.f32 %v861_v46, %v668_v56 }
 0x7c6   :  { %842 = vmatmul.msk.f32.gmra.mxu1 %vm111_vm0, %v673_v57  ;;  %vm795_vm0 = vcmask 254976  }
 0x83b   :  { %v705_v28 = vpop.f32.mrf.mxu1 }
 0x83c   :  { %v706_v31 = vadd.f32 %v862_v44, %v705_v28 }
 0x83e   :  { %v711_v21 = vmul.f32 %v706_v31, %v706_v31 }
 0x840   :  { %v713_v36 = vmul.f32 %v711_v21, %v706_v31 }
 0x842   :  { %v715_v41 = vmul.f32 0.044715, %v713_v36 }
 0x843   :  { %v708_v47 = vpop.f32.mrf.mxu1 }
 0x844   :  { %v717_v5 = vadd.f32 %v715_v41, %v706_v31  ;;  %v709_v7 = vadd.f32 %v862_v44, %v708_v47 }
 0x846   :  { %v719_v8 = vmul.f32 0.7978846, %v717_v5  ;;  %v712_v9 = vmul.f32 %v709_v7, %v709_v7 }
 0x848   :  { %906 = vtanh.f32 %v719_v8  ;;  %v714_v12 = vmul.f32 %v712_v9, %v709_v7 }
 0x84a   :  { %v716_v13 = vmul.f32 0.044715, %v714_v12 }
 0x84c   :  { %v718_v14 = vadd.f32 %v716_v13, %v709_v7 }
 0x84e   :  { %v907_v15 = vpop.eup %906  ;;  %v720_v0 = vmul.f32 0.7978846, %v718_v14 }
 0x84f   :  { %v723_v16 = vadd.f32 1.0, %v907_v15 }
 0x850   :  { %908 = vtanh.f32 %v720_v0 }
 0x851   :  { %v725_v17 = vmul.f32 0.5, %v723_v16 }
 0x853   :  { %v727_v18 = vmul.f32 %v725_v17, %v706_v31 }
 0x855   :  { %843 = vmatmul.msk.f32.vlgmr.msrb.gmra.mxu2 %vm549_vm9, %v727_v18 }
 0x856   :  { %v909_v19 = vpop.eup %908 }
 0x857   :  { %v724_v2 = vadd.f32 1.0, %v909_v19 }
 0x859   :  { %v726_v20 = vmul.f32 0.5, %v724_v2 }
 0x85b   :  { %v728_v22 = vmul.f32 %v726_v20, %v709_v7 }
 0x85d   :  { %844 = vmatmul.msk.f32.gmra.mxu2 %vm549_vm9, %v728_v22 }
 0x8d8   :  { %v764_v23 = vpop.f32.mrf.mxu2 }
 0x8d9   :  { %v765_v26 = vadd.f32 %v863_v24, %v764_v23 }
 0x8db   :  { %v770_v30 = vadd.f32 %v765_v26, %v1293_v6 }
 0x8e0   :  { %v767_v25 = vpop.f32.mrf.mxu2 }
 0x8e1   :  { %v768_v27 = vadd.f32 %v863_v24, %v767_v25 }
 0x8e3   :  { %v771_v29 = vadd.f32 %v768_v27, %v1298_v11 }
 0x8e5   :  { %789 = vmatpush.msrb.mxu1 %v771_v29 }
 0x8e7   :  { %790 = vmatpush.msrb.mxu1 %v770_v30 }
 0x8e8   :  { %845 = vmatmul.msk.f32.vlgmr.msrb.gmra.mxu1 %vm381_vm8, %v100_v32 }
 0x965   :  { %v792_v11 = vpop.f32.mrf.mxu1 }
 0x966   :  { %796 = vst.msk [vmem:[#allocation2] sm:$0x3] %vm795_vm0, %v792_v11 }
 0x967   :  { %807 = dma.vmem_to_hbm [thread:$0]  %s803_s6, 32, %s805_s19, [#allocation3]  }
 0x968   :  { %934 = dma.done.wait [#allocation3], 32  }
 0x969   :  { %935 = vsyncadd [#allocation3], 4294967264 }
 0x96a   :  { %812 = vsyncpa [#allocation3], 1 }

</bundles_post_ra>
